<compile_context>
chip_gen: v6e
topology: v6e:2x2x1
jax: 0.10.0
libtpu: 0.0.40
codegen_flags: <defaults>
</compile_context>

<pallas_src>
import jax
import jax.numpy as jnp
from jax.experimental import pallas as pl
from jax.experimental.pallas import tpu as pltpu


def _round_up(x, m):
    return ((x + m - 1) // m) * m


def _rotation_kernel_bias(x_ref, w_ref, b_ref, o_ref):
    # x_ref: (TN, CINp)  w_ref: (CINp, TCOUT)  b_ref: (1, TCOUT)  o_ref: (TN, TCOUT)
    y = jnp.dot(x_ref[...], w_ref[...], preferred_element_type=jnp.float32)
    o_ref[...] = (y + b_ref[...]).astype(o_ref.dtype)


def _rotation_kernel_nobias(x_ref, w_ref, o_ref):
    y = jnp.dot(x_ref[...], w_ref[...], preferred_element_type=jnp.float32)
    o_ref[...] = y.astype(o_ref.dtype)


def _vmem_capacity_bytes():
    # Per-chip VMEM capacity; conservative fallback = v7x per-TensorCore 64 MiB.
    try:
        return int(pltpu.get_tpu_info().vmem_capacity_bytes)
    except Exception:
        return 64 << 20


def linear_layer_rotation(x, rotation_matrix, bias=None, *,
                          tile_n=1024, compute_dtype=None):
    """Pallas implementation of LinearLayerRotation.forward.

    x:               (N, cin)  if bias is None, else (N, cin - 1)
    rotation_matrix: (cout, cin)
    bias:            optional scalar
    compute_dtype:   optional narrow dtype (e.g. jnp.bfloat16) for MXU inputs;
                     accumulation stays f32. Opt-in to preserve exactness.
    returns          (N, cout) in x.dtype
    """
    n, cin_x = x.shape
    cout, cin_w = rotation_matrix.shape
    out_dtype = x.dtype

    if bias is not None:
        assert cin_x + 1 == cin_w, (
            f"with bias, x must have {cin_w - 1} features, got {cin_x}")
        w_main = rotation_matrix[:, :cin_x]
        # Fold the bias column into a (1, cout) epilogue add, in f32:
        #   [x, bias] @ W^T = x @ W[:, :cin-1]^T + bias * W[:, cin-1]
        bias_row = (rotation_matrix[:, cin_x].astype(jnp.float32)
                    * jnp.float32(bias)).reshape(1, cout)
    else:
        assert cin_x == cin_w, (
            f"feature mismatch: x has {cin_x}, W expects {cin_w}")
        w_main = rotation_matrix
        bias_row = None

    if compute_dtype is not None:
        x = x.astype(compute_dtype)
        w_main = w_main.astype(compute_dtype)
    else:
        w_main = w_main.astype(x.dtype)

    cin = cin_x
    in_bytes = jnp.dtype(x.dtype).itemsize
    out_bytes = jnp.dtype(out_dtype).itemsize

    # --- lane-align the contracting dim (bias slice typically makes it 128k-1) ---
    cin_128 = _round_up(cin, 128)
    if cin_128 - cin <= max(cin // 8, 1):
        cin_p = cin_128                 # cheap: 127 -> 128, 1000 -> 1024
    else:
        cin_p = _round_up(cin, 8)       # small cin: sublane alignment only
    if cin_p != cin:
        x = jnp.pad(x, ((0, 0), (0, cin_p - cin)))
        w_main = jnp.pad(w_main, ((0, 0), (0, cin_p - cin)))

    # --- native MXU layout: one-time XLA transpose of the weight ---
    w_t = jnp.transpose(w_main)         # (cin_p, cout)

    # --- tiling / VMEM budget ---------------------------------------------
    vmem_cap = _vmem_capacity_bytes()
    budget = int(0.70 * vmem_cap)

    # Tile cout only when a fully resident W tile would dominate VMEM
    # (bounds footprint on v7x's 64 MiB and gives a 2nd parallel axis).
    tcout = cout
    if cout > 512 and 2 * cin_p * cout * in_bytes > budget // 2:
        tcout = 512
        while tcout > 128 and 2 * cin_p * tcout * in_bytes > budget // 2:
            tcout //= 2
    grid_cout = pl.cdiv(cout, tcout)

    # Dtype-aware sublane multiple for TN (f32: 8, bf16: 16, int8/fp8: 32).
    sub = max(8, 32 // in_bytes)
    bias_bytes = 2 * tcout * 4 if bias is not None else 0
    w_tile_bytes = 2 * cin_p * tcout * in_bytes            # double-buffer alloc
    per_row = 2 * (cin_p * in_bytes + tcout * out_bytes)   # dbl-buffered x + out
    tn_cap = max((budget - w_tile_bytes - bias_bytes) // per_row, sub)
    tn = min(int(tile_n), int(tn_cap), _round_up(n, sub))
    tn = max((tn // sub) * sub, sub)
    grid_n = pl.cdiv(n, tn)

    footprint = (2 * tn * cin_p * in_bytes + w_tile_bytes
                 + 2 * tn * tcout * out_bytes + bias_bytes)
    vmem_limit = int(min(max(int(footprint * 1.2) + (2 << 20), 4 << 20),
                         int(0.85 * vmem_cap)))

    cost = pl.CostEstimate(
        flops=2 * n * cin_p * cout,
        transcendentals=0,
        bytes_accessed=(in_bytes * (n * cin_p + cin_p * cout)
                        + (4 * cout if bias is not None else 0)
                        + out_bytes * n * cout),
    )

    # Grid: (cout tiles, N tiles). N innermost so the W tile (constant over the
    # inner loop) is fetched once per cout tile; both axes are independent.
    x_spec = pl.BlockSpec((tn, cin_p), lambda j, i: (i, 0))
    w_spec = pl.BlockSpec((cin_p, tcout), lambda j, i: (0, j))
    o_spec = pl.BlockSpec((tn, tcout), lambda j, i: (i, j))
    # Note: pipeline_mode=pl.Buffered(1) on the W/bias specs would halve their
    # VMEM allocation (they are DMA'd once per cout tile); omitted here to stay
    # on the most portable pallas_call pipelining path.

    common = dict(
        out_shape=jax.ShapeDtypeStruct((n, cout), out_dtype),
        compiler_params=pltpu.CompilerParams(
            dimension_semantics=("parallel", "parallel"),
            vmem_limit_bytes=vmem_limit,
        ),
        cost_estimate=cost,
    )

    if bias is not None:
        b_spec = pl.BlockSpec((1, tcout), lambda j, i: (0, j))
        y = pl.pallas_call(
            _rotation_kernel_bias,
            grid_spec=pltpu.PrefetchScalarGridSpec(
                num_scalar_prefetch=0,
                grid=(grid_cout, grid_n),
                in_specs=[x_spec, w_spec, b_spec],
                out_specs=o_spec),
            **common,
        )(x, w_t, bias_row)
    else:
        y = pl.pallas_call(
            _rotation_kernel_nobias,
            grid_spec=pltpu.PrefetchScalarGridSpec(
                num_scalar_prefetch=0,
                grid=(grid_cout, grid_n),
                in_specs=[x_spec, w_spec],
                out_specs=o_spec),
            **common,
        )(x, w_t)
    return y


if __name__ == "__main__":
    key = jax.random.PRNGKey(0)
    k_w, k_x, k_w2, k_x2 = jax.random.split(key, 4)

    # --- Small shapes matching the module spec (bias path) ---
    N, CIN, COUT = 8, 32, 32
    bias = 0.5
    W = jax.random.normal(k_w, (COUT, CIN), dtype=jnp.float32)
    # With bias set, the module expects x with CIN - 1 features.
    x = jax.random.normal(k_x, (N, CIN - 1), dtype=jnp.float32)

    y = jax.block_until_ready(linear_layer_rotation(x, W, bias=bias))
    x_aug = jnp.concatenate([x, jnp.full((N, 1), bias, dtype=x.dtype)], axis=1)
    y_ref = jnp.matmul(x_aug, W.T, precision=jax.lax.Precision.HIGHEST)
    assert y.shape == (N, COUT)
    assert jnp.allclose(y, y_ref, atol=1e-5, rtol=1e-5), "bias path mismatch"

    # --- bias=None path (no-bias kernel variant) ---
    x_full = jax.random.normal(k_x, (N, CIN), dtype=jnp.float32)
    y2 = jax.block_until_ready(linear_layer_rotation(x_full, W, bias=None))
    y2_ref = jnp.matmul(x_full, W.T, precision=jax.lax.Precision.HIGHEST)
    assert jnp.allclose(y2, y2_ref, atol=1e-5, rtol=1e-5), "no-bias path mismatch"

    # --- Larger, non-divisible N: exercises pipelined grid, the lane-padded
    #     contracting dim (127 -> 128), and the masked partial final tile.
    N2, CIN2, COUT2 = 1030, 128, 256
    W2 = jax.random.normal(k_w2, (COUT2, CIN2), dtype=jnp.float32)
    x2 = jax.random.normal(k_x2, (N2, CIN2 - 1), dtype=jnp.float32)
    y3 = jax.block_until_ready(
        linear_layer_rotation(x2, W2, bias=0.25, tile_n=512))
    x2_aug = jnp.concatenate(
        [x2, jnp.full((N2, 1), 0.25, dtype=x2.dtype)], axis=1)
    y3_ref = jnp.matmul(x2_aug, W2.T, precision=jax.lax.Precision.HIGHEST)
    assert y3.shape == (N2, COUT2)
    assert jnp.allclose(y3, y3_ref, atol=2e-3, rtol=2e-3), "large path mismatch"

    print("KERNEL_OK")
</pallas_src>

<mosaic_0001>
module attributes {stable_mosaic.version = 11 : i64} {
  func.func @_rotation_kernel_bias(%arg0: i32, %arg1: i32, %arg2: memref<8x32xf32, #tpu.memory_space<vmem>>, %arg3: memref<32x32xf32, #tpu.memory_space<vmem>>, %arg4: memref<1x32xf32, #tpu.memory_space<vmem>>, %arg5: memref<8x32xf32, #tpu.memory_space<vmem>>) attributes {dimension_semantics = [#tpu.dimension_semantics<parallel>, #tpu.dimension_semantics<parallel>], iteration_bounds = array<i64: 1, 1>, scalar_prefetch = 0 : i64, scratch_operands = 0 : i64, tpu.core_type = #tpu.core_type<tc>, window_params = [{transform_indices = @transform_0, window_bounds = array<i64: 8, 32>}, {transform_indices = @transform_1, window_bounds = array<i64: 32, 32>}, {transform_indices = @transform_2, window_bounds = array<i64: 1, 32>}, {transform_indices = @transform_3, window_bounds = array<i64: 8, 32>}]} {
    %c0 = arith.constant 0 : index
    %c0_0 = arith.constant 0 : index
    %0 = vector.load %arg2[%c0, %c0_0] : memref<8x32xf32, #tpu.memory_space<vmem>>, vector<8x32xf32>
    %c0_1 = arith.constant 0 : index
    %c0_2 = arith.constant 0 : index
    %1 = vector.load %arg3[%c0_1, %c0_2] : memref<32x32xf32, #tpu.memory_space<vmem>>, vector<32x32xf32>
    %cst = arith.constant dense<0.000000e+00> : vector<8x32xf32>
    %2 = tpu.matmul %0, %1, %cst {dimension_numbers = #tpu.dot_dimension_numbers<[1], [0], [0], [1], [0, 0, 1, 1], [], []>} : vector<8x32xf32>, vector<32x32xf32>, vector<8x32xf32> -> vector<8x32xf32>
    %c0_3 = arith.constant 0 : index
    %c0_4 = arith.constant 0 : index
    %3 = vector.load %arg4[%c0_3, %c0_4] : memref<1x32xf32, #tpu.memory_space<vmem>>, vector<1x32xf32>
    %4 = vector.broadcast %3 : vector<1x32xf32> to vector<8x32xf32>
    %5 = arith.addf %2, %4 : vector<8x32xf32>
    %c0_5 = arith.constant 0 : index
    %c0_6 = arith.constant 0 : index
    %6 = vector.load %arg5[%c0_5, %c0_6] : memref<8x32xf32, #tpu.memory_space<vmem>>, vector<8x32xf32>
    tpu.vector_store %arg5[%c0_5, %c0_6], %5 {strides = array<i32>} : memref<8x32xf32, #tpu.memory_space<vmem>>, vector<8x32xf32>,
    return
  }
  func.func @transform_0(%arg0: i32, %arg1: i32) -> (i32, i32) {
    %c0_i32 = arith.constant 0 : i32
    %c0_i32_0 = arith.constant 0 : i32
    return %arg1, %c0_i32 : i32, i32
  }
  func.func @transform_1(%arg0: i32, %arg1: i32) -> (i32, i32) {
    %c0_i32 = arith.constant 0 : i32
    %c0_i32_0 = arith.constant 0 : i32
    return %c0_i32, %arg0 : i32, i32
  }
  func.func @transform_2(%arg0: i32, %arg1: i32) -> (i32, i32) {
    %c0_i32 = arith.constant 0 : i32
    %c0_i32_0 = arith.constant 0 : i32
    return %c0_i32, %arg0 : i32, i32
  }
  func.func @transform_3(%arg0: i32, %arg1: i32) -> (i32, i32) {
    %c0_i32 = arith.constant 0 : i32
    return %arg1, %arg0 : i32, i32
  }
}

</mosaic_0001>

<bundles_post_ra>
// kernel: tpu_custom_call.1
= control target key start
LH: loop header
LB: loop body
LE: loop exit
PB: predicated region body
PF: predicated region fallthrough
CT: control target
= control target key end

     0   :  { %8 = vsyncpa [#allocation3], 0  ;;  %s274_s0 = inlined_call_operand.hbm [shape: f32[8,32], index: 0, kind: input, shape index: {}]   ;;  %s275_s1 = inlined_call_operand.hbm [shape: f32[32,32], index: 1, kind: input, shape index: {}]   ;;  %s276_s2 = inlined_call_operand.vmem [shape: f32[1,32], index: 2, kind: input, shape index: {}]   ;;  %s277_s3 = inlined_call_operand.hbm [shape: f32[8,32], index: 3, kind: output, shape index: {}]  }
   0x1   :  { %9 = vsyncpa [#allocation6], 0 }
   0x2   :  { %10 = vsyncpa [#allocation4], 0  ;;  %s235_s12 = smov [#allocation2]   ;;  %s236_s14 = smov [#allocation5]  }
   0x3   :  { %s17_s13 = sshll.u32 %s235_s12, 4  ;;  %s26_s15 = sshll.u32 %s236_s14, 4  ;;  %s18_s13 = int_to_ptr.vmem [resolvable:$true] %s17_s13  ;;  %s27_s15 = int_to_ptr.vmem [resolvable:$true] %s26_s15 }
   0x4   :  { %s177_s16 = scalar_lea.vmem %s18_s13, 128  ;;  %p182_p1 = scmp.lt.s32.totalorder %s18_s13, %s18_s13 }
   0x5   :  { %p178_p0 = scmp.ne.s32.totalorder %s18_s13, %s177_s16  ;;  %p183_p2 = scmp.lt.s32.totalorder %s177_s16, %s177_s16 }
   0x7   :  { %p184_p3 = por %p183_p2, %p182_p1 }
   0x9   :  { %p185_p4 = pnand %p184_p3, %p178_p0 }
   0xb   :  { %188 = shalt.err (!%p185_p4)
}
   0xc   :  { %20 = dma.hbm_to_vmem [thread:$0]  %s274_s0, 128, %s18_s13, [#allocation3]  }
   0xd   :  { %s197_s19 = scalar_lea.vmem %s27_s15, 512  ;;  %p202_p6 = scmp.lt.s32.totalorder %s27_s15, %s27_s15 }
   0xe   :  { %p198_p5 = scmp.ne.s32.totalorder %s27_s15, %s197_s19  ;;  %p203_p7 = scmp.lt.s32.totalorder %s197_s19, %s197_s19 }
  0x10   :  { %p204_p8 = por %p203_p7, %p202_p6 }
  0x12   :  { %p205_p9 = pnand %p204_p8, %p198_p5 }
  0x14   :  { %208 = shalt.err (!%p205_p9)
}
  0x15   :  { %s237_s20 = smov 128   ;;  %s238_s21 = smov 8  }
  0x16   :  { %32 = dma.hbm_to_vmem [thread:$0]  %s275_s1, 512, %s27_s15, [#allocation6], %s237_s20, %s237_s20, %s238_s21  }
  0x17   :  { %229 = dma.done.wait [#allocation3], 128  }
  0x18   :  { %230 = vsyncadd [#allocation3], 4294967168 }
  0x19   :  { %231 = dma.done.wait [#allocation6], 512  }
  0x1a   :  { %232 = vsyncadd [#allocation6], 4294966784  ;;  %v239_v0 = vmov 0.0   ;;  %vm240_vm0 = vmmov 0   ;;  %v45_v1 = vld [vmem:[#allocation5 + $0x18] sm:$0xff]  ;;  %v44_v2 = vld [vmem:[#allocation5 + $0x10] sm:$0xff] }
  0x1b   :  { %151 = vmatprep.subr.mxu0 %v239_v0  ;;  %159 = vmatprep.mubr.msk.f32.mxu0 %vm240_vm0, %v239_v0  ;;  %v43_v3 = vld [vmem:[#allocation5 + $0x8] sm:$0xff]  ;;  %v42_v4 = vld [vmem:[#allocation5] sm:$0xff]  ;;  %v41_v5 = vld [vmem:[#allocation2] sm:$0xff]  ;;  %vm53_vm1 = vcmask 261120   ;;  %s241_s24 = smov [#allocation7]  }
  0x1c   :  { %152 = vmatpush3.msra.mxu0 %v45_v1  ;;  %v144_v6 = vld [vmem:[%s276_s2] ss:$0 sm:$0xff]  ;;  %s134_s25 = sshll.u32 %s241_s24, 4  ;;  %s135_s25 = int_to_ptr.vmem [resolvable:$true] %s134_s25 }
  0x1d   :  { %153 = vmatprep.subr.mxu0 %v239_v0  ;;  %s209_s26 = scalar_lea.vmem %s135_s25, 128  ;;  %p214_p11 = scmp.lt.s32.totalorder %s135_s25, %s135_s25 }
  0x1e   :  { %154 = vmatpush3.msra.mxu0 %v44_v2  ;;  %p210_p10 = scmp.ne.s32.totalorder %s135_s25, %s209_s26  ;;  %p215_p12 = scmp.lt.s32.totalorder %s209_s26, %s209_s26 }
  0x1f   :  { %155 = vmatprep.subr.mxu0 %v239_v0 }
  0x20   :  { %156 = vmatpush3.msra.mxu0 %v43_v3  ;;  %p216_p13 = por %p215_p12, %p214_p11 }
  0x21   :  { %157 = vmatprep.subr.mxu0 %v239_v0 }
  0x22   :  { %158 = vmatpush3.msra.mxu0 %v42_v4  ;;  %p217_p0 = pnand %p216_p13, %p210_p10 }
  0x23   :  { %160 = vmatmul.mubr.msk.f32.vlgmr.msra.gmra.mxu0 %vm53_vm1, %v41_v5 }
  0xe3   :  { %v123_v7 = vpop.f32.mrf.mxu0 }
  0xe4   :  { %v124_v8 = vadd.f32 %v144_v6, %v123_v7 }
  0xe5   :  { %v161_v9 = vpop.f32.mrf.mxu0 }
  0xe6   :  { %127 = vst.msk [vmem:[#allocation7] sm:$0xff] %vm53_vm1, %v124_v8 }
  0xe7   :  { %220 = shalt.err (!%p217_p0)
}
  0xe8   :  { %137 = dma.vmem_to_hbm [thread:$0]  %s135_s25, 128, %s277_s3, [#allocation4]  }
  0xe9   :  { %233 = dma.done.wait [#allocation4], 128  }
  0xea   :  { %234 = vsyncadd [#allocation4], 4294967168 }
  0xeb   :  { %141 = vsyncpa [#allocation3], 1 }
  0xec   :  { %142 = vsyncpa [#allocation6], 1 }
  0xed   :  { %143 = vsyncpa [#allocation4], 1 }

</bundles_post_ra>
